<compile_context>
chip_gen: v7x
topology: tpu7x:2x2x1
jax: 0.10.0
libtpu: 0.0.40
codegen_flags: <defaults>
</compile_context>

<pallas_src>
import functools

import jax
import jax.numpy as jnp
from jax.experimental import pallas as pl
from jax.experimental.pallas import tpu as pltpu


def _triplet_loss_kernel(a_ref, p_ref, n_ref, o_ref, acc_ref, *,
                         margin, batch, tb, tiles_per_slice, inv_batch,
                         needs_mask):
    c = pl.program_id(0)            # parallel slice (megacore on v7x)
    i = pl.program_id(1)            # reduction step within the slice
    t = c * tiles_per_slice + i     # logical global batch tile index

    @pl.when(i == 0)
    def _():
        acc_ref[...] = jnp.zeros_like(acc_ref)

    a = a_ref[...].astype(jnp.float32)
    p = p_ref[...].astype(jnp.float32)
    n = n_ref[...].astype(jnp.float32)

    dp = a - p
    dn = a - n
    # Fused single cross-lane reduction: sum((a-p)^2) - sum((a-n)^2).
    diff = jnp.sum(dp * dp - dn * dn, axis=1, keepdims=True)   # (TB, 1)
    losses = jnp.maximum(diff + margin, 0.0)                   # (TB, 1)

    if needs_mask:
        # Only tiles touching (or past) the batch boundary pay for masking.
        is_boundary = (t + 1) * tb > batch

        @pl.when(jnp.logical_not(is_boundary))
        def _():
            acc_ref[...] += jnp.sum(losses).reshape(1, 1)

        @pl.when(is_boundary)
        def _():
            row = t * tb + jax.lax.broadcasted_iota(jnp.int32, (tb, 1), 0)
            masked = jnp.where(row < batch, losses, 0.0)
            acc_ref[...] += jnp.sum(masked).reshape(1, 1)
    else:
        acc_ref[...] += jnp.sum(losses).reshape(1, 1)

    @pl.when(i == pl.num_programs(1) - 1)
    def _():
        # Lane-dense (8,128) output block; every element holds this slice's
        # partial mean contribution. The wrapper reads [0, 0] of each block.
        o_ref[...] = jnp.broadcast_to(acc_ref[...] * inv_batch, o_ref.shape)


def _vmem_budget_and_limit():
    """Generation-aware (tiling budget, vmem_limit_bytes)."""
    try:
        cap = int(pltpu.get_tpu_info().vmem_capacity_bytes)
    except Exception:  # pragma: no cover - fall back to v7x-safe values
        cap = 0
    if cap >= 96 * 1024 * 1024:
        # v5e / v6e: 128 MiB physical VMEM.
        return 64 * 1024 * 1024, 96 * 1024 * 1024
    # v7x (64 MiB physical) or unknown: stay conservative.
    return 28 * 1024 * 1024, 44 * 1024 * 1024


def _pick_batch_tile(batch, feat, itemsize, vmem_budget_bytes):
    """Largest mult-of-8 batch tile with 3 inputs x 2 buffers under budget."""
    max_tb = vmem_budget_bytes // (3 * 2 * feat * itemsize)
    max_tb = max(8, (max_tb // 8) * 8)
    padded_b = ((batch + 7) // 8) * 8          # no point exceeding the batch
    return int(min(8192, max_tb, padded_b))


def triplet_loss(anchor, positive, negative, margin=1.0, batch_tile=None):
    """anchor/positive/negative: (B, D) arrays (f32 or bf16 -- bf16 is the
    bandwidth-saving fast path; accumulation is always f32). Returns scalar
    float32 loss with the module's squared-L2 semantics."""
    assert anchor.shape == positive.shape == negative.shape
    assert anchor.ndim == 2
    B, D = anchor.shape
    itemsize = jnp.dtype(anchor.dtype).itemsize

    vmem_budget, vmem_limit = _vmem_budget_and_limit()
    if batch_tile is None:
        TB = _pick_batch_tile(B, D, itemsize, vmem_budget)
    else:
        TB = max(8, (int(batch_tile) // 8) * 8)

    num_tiles = pl.cdiv(B, TB)
    # Leading "parallel" axis of size 2 lets v7x use both TensorCores;
    # it is a cheap serial outer loop on single-TC chips.
    num_slices = 2 if num_tiles >= 2 else 1
    tiles_per_slice = pl.cdiv(num_tiles, num_slices)
    covered_rows = num_slices * tiles_per_slice * TB
    needs_mask = covered_rows != B

    if num_slices * tiles_per_slice == num_tiles:
        in_index_map = lambda c, i: (c * tiles_per_slice + i, 0)
    else:
        # Odd tile count: the last (c, i) pair re-reads the final real block;
        # its logical rows are >= B, so the in-kernel mask zeroes it out.
        last_block = num_tiles - 1
        in_index_map = lambda c, i: (
            jnp.minimum(c * tiles_per_slice + i, last_block), 0)

    kernel = functools.partial(
        _triplet_loss_kernel,
        margin=float(margin), batch=B, tb=TB,
        tiles_per_slice=tiles_per_slice, inv_batch=1.0 / B,
        needs_mask=needs_mask)

    in_spec = pl.BlockSpec((TB, D), in_index_map)

    out = pl.pallas_call(
        kernel,
        out_shape=jax.ShapeDtypeStruct((num_slices * 8, 128), jnp.float32),
        grid_spec=pltpu.PrefetchScalarGridSpec(
            num_scalar_prefetch=0,
            grid=(num_slices, tiles_per_slice),
            in_specs=[in_spec, in_spec, in_spec],
            out_specs=pl.BlockSpec((8, 128), lambda c, i: (c, 0)),
            scratch_shapes=[pltpu.VMEM((1, 1), jnp.float32)],
        ),
        compiler_params=pltpu.CompilerParams(
            dimension_semantics=("parallel", "arbitrary"),
            vmem_limit_bytes=vmem_limit,
        ),
    )(anchor, positive, negative)

    partials = out.reshape(num_slices, 8, 128)[:, 0, 0]   # one per slice
    return jnp.sum(partials)


def _ref_loss(a, p, n, margin):
    a = a.astype(jnp.float32)
    p = p.astype(jnp.float32)
    n = n.astype(jnp.float32)
    d_pos = jnp.sum((a - p) ** 2, axis=1)
    d_neg = jnp.sum((a - n) ** 2, axis=1)
    return jnp.mean(jnp.maximum(d_pos - d_neg + margin, 0.0))


if __name__ == "__main__":
    key = jax.random.PRNGKey(0)
    k1, k2, k3 = jax.random.split(key, 3)

    # Small embedding triplets, consistent with typical TripletLoss usage.
    B, D = 8, 32
    anchor = jax.random.normal(k1, (B, D), dtype=jnp.float32)
    positive = jax.random.normal(k2, (B, D), dtype=jnp.float32)
    negative = jax.random.normal(k3, (B, D), dtype=jnp.float32)

    loss = triplet_loss(anchor, positive, negative, margin=1.0)
    jax.block_until_ready(loss)
    ref = _ref_loss(anchor, positive, negative, 1.0)
    assert jnp.allclose(loss, ref, atol=1e-5, rtol=1e-5), (loss, ref)

    # Multi-tile + two-slice grid with a remainder tile and a duplicated
    # (fully masked) tile: 300 rows, 128-row batch tile -> 3 real tiles split
    # over 2 slices of 2 steps each.
    k4, k5, k6 = jax.random.split(jax.random.PRNGKey(1), 3)
    B2, D2 = 300, 128
    a2 = jax.random.normal(k4, (B2, D2), dtype=jnp.float32)
    p2 = jax.random.normal(k5, (B2, D2), dtype=jnp.float32)
    n2 = jax.random.normal(k6, (B2, D2), dtype=jnp.float32)
    loss2 = triplet_loss(a2, p2, n2, margin=0.5, batch_tile=128)
    jax.block_until_ready(loss2)
    ref2 = _ref_loss(a2, p2, n2, 0.5)
    assert jnp.allclose(loss2, ref2, atol=1e-5, rtol=1e-5), (loss2, ref2)

    # bf16 fast path (halves HBM bytes; kernel upcasts to f32 internally).
    k7, k8, k9 = jax.random.split(jax.random.PRNGKey(2), 3)
    B3, D3 = 64, 128
    a3 = jax.random.normal(k7, (B3, D3), dtype=jnp.float32).astype(jnp.bfloat16)
    p3 = jax.random.normal(k8, (B3, D3), dtype=jnp.float32).astype(jnp.bfloat16)
    n3 = jax.random.normal(k9, (B3, D3), dtype=jnp.float32).astype(jnp.bfloat16)
    loss3 = triplet_loss(a3, p3, n3, margin=1.0)
    jax.block_until_ready(loss3)
    ref3 = _ref_loss(a3, p3, n3, 1.0)
    assert jnp.allclose(loss3, ref3, atol=1e-3, rtol=1e-3), (loss3, ref3)

    print("KERNEL_OK")
</pallas_src>

<mosaic_0001>
module attributes {stable_mosaic.version = 11 : i64} {
  func.func @_triplet_loss_kernel(%arg0: i32, %arg1: i32, %arg2: memref<8x32xf32, #tpu.memory_space<vmem>>, %arg3: memref<8x32xf32, #tpu.memory_space<vmem>>, %arg4: memref<8x32xf32, #tpu.memory_space<vmem>>, %arg5: memref<8x128xf32, #tpu.memory_space<vmem>>, %arg6: memref<1x1xf32, #tpu.memory_space<vmem>>) attributes {dimension_semantics = [#tpu.dimension_semantics<parallel>, #tpu.dimension_semantics<arbitrary>], iteration_bounds = array<i64: 1, 1>, scalar_prefetch = 0 : i64, scratch_operands = 1 : i64, tpu.core_type = #tpu.core_type<tc>, window_params = [{transform_indices = @transform_0, window_bounds = array<i64: 8, 32>}, {transform_indices = @transform_1, window_bounds = array<i64: 8, 32>}, {transform_indices = @transform_2, window_bounds = array<i64: 8, 32>}, {transform_indices = @transform_3, window_bounds = array<i64: 8, 128>}]} {
    %c0_i32 = arith.constant 0 : i32
    %0 = arith.cmpi eq, %arg1, %c0_i32 : i32
    %1 = arith.extui %0 : i1 to i32
    %c0_i32_0 = arith.constant 0 : i32
    %2 = arith.cmpi ne, %1, %c0_i32_0 : i32
    scf.if %2 {
      %cst_15 = arith.constant 0.000000e+00 : f32
      %28 = vector.broadcast %cst_15 : f32 to vector<1x1xf32>
      %c0_16 = arith.constant 0 : index
      %c0_17 = arith.constant 0 : index
      %29 = vector.load %arg6[%c0_16, %c0_17] : memref<1x1xf32, #tpu.memory_space<vmem>>, vector<1x1xf32>
      tpu.vector_store %arg6[%c0_16, %c0_17], %28 {strides = array<i32>} : memref<1x1xf32, #tpu.memory_space<vmem>>, vector<1x1xf32>,
    } else {
    }
    %c0 = arith.constant 0 : index
    %c0_1 = arith.constant 0 : index
    %3 = vector.load %arg2[%c0, %c0_1] : memref<8x32xf32, #tpu.memory_space<vmem>>, vector<8x32xf32>
    %c0_2 = arith.constant 0 : index
    %c0_3 = arith.constant 0 : index
    %4 = vector.load %arg3[%c0_2, %c0_3] : memref<8x32xf32, #tpu.memory_space<vmem>>, vector<8x32xf32>
    %c0_4 = arith.constant 0 : index
    %c0_5 = arith.constant 0 : index
    %5 = vector.load %arg4[%c0_4, %c0_5] : memref<8x32xf32, #tpu.memory_space<vmem>>, vector<8x32xf32>
    %6 = arith.subf %3, %4 : vector<8x32xf32>
    %7 = arith.subf %3, %5 : vector<8x32xf32>
    %8 = arith.mulf %6, %6 : vector<8x32xf32>
    %9 = arith.mulf %7, %7 : vector<8x32xf32>
    %10 = arith.subf %8, %9 : vector<8x32xf32>
    %cst = arith.constant dense<0.000000e+00> : vector<8xf32>
    %11 = vector.multi_reduction <add>, %10, %cst [1] : vector<8x32xf32> to vector<8xf32>
    %12 = vector.shape_cast %11 : vector<8xf32> to vector<8x1xf32>
    %cst_6 = arith.constant 1.000000e+00 : f32
    %13 = vector.broadcast %cst_6 : f32 to vector<8x1xf32>
    %14 = arith.addf %12, %13 : vector<8x1xf32>
    %cst_7 = arith.constant 0.000000e+00 : f32
    %15 = vector.broadcast %cst_7 : f32 to vector<8x1xf32>
    %16 = arith.maximumf %14, %15 : vector<8x1xf32>
    %c0_8 = arith.constant 0 : index
    %c0_9 = arith.constant 0 : index
    %17 = vector.load %arg6[%c0_8, %c0_9] : memref<1x1xf32, #tpu.memory_space<vmem>>, vector<1x1xf32>
    %18 = vector.shape_cast %16 : vector<8x1xf32> to vector<1x8x1xf32>
    %cst_10 = arith.constant dense<0.000000e+00> : vector<1xf32>
    %19 = vector.multi_reduction <add>, %18, %cst_10 [1, 2] : vector<1x8x1xf32> to vector<1xf32>
    %20 = vector.shape_cast %19 : vector<1xf32> to vector<1x1x1xf32>
    %21 = vector.extract %20[0, 0, 0] : f32 from vector<1x1x1xf32>
    %22 = vector.broadcast %21 : f32 to vector<1x1xf32>
    %23 = arith.addf %17, %22 : vector<1x1xf32>
    %c0_11 = arith.constant 0 : index
    %c0_12 = arith.constant 0 : index
    %24 = vector.load %arg6[%c0_11, %c0_12] : memref<1x1xf32, #tpu.memory_space<vmem>>, vector<1x1xf32>
    tpu.vector_store %arg6[%c0_11, %c0_12], %23 {strides = array<i32>} : memref<1x1xf32, #tpu.memory_space<vmem>>, vector<1x1xf32>,
    %c0_i32_13 = arith.constant 0 : i32
    %25 = arith.cmpi eq, %arg1, %c0_i32_13 : i32
    %26 = arith.extui %25 : i1 to i32
    %c0_i32_14 = arith.constant 0 : i32
    %27 = arith.cmpi ne, %26, %c0_i32_14 : i32
    scf.if %27 {
      %c0_15 = arith.constant 0 : index
      %c0_16 = arith.constant 0 : index
      %28 = vector.load %arg6[%c0_15, %c0_16] : memref<1x1xf32, #tpu.memory_space<vmem>>, vector<1x1xf32>
      %cst_17 = arith.constant 1.250000e-01 : f32
      %29 = vector.broadcast %cst_17 : f32 to vector<1x1xf32>
      %30 = arith.mulf %28, %29 : vector<1x1xf32>
      %31 = vector.shape_cast %30 : vector<1x1xf32> to vector<1x1xf32>
      %32 = vector.broadcast %31 : vector<1x1xf32> to vector<8x128xf32>
      %c0_18 = arith.constant 0 : index
      %c0_19 = arith.constant 0 : index
      %33 = vector.load %arg5[%c0_18, %c0_19] : memref<8x128xf32, #tpu.memory_space<vmem>>, vector<8x128xf32>
      tpu.vector_store %arg5[%c0_18, %c0_19], %32 {strides = array<i32>} : memref<8x128xf32, #tpu.memory_space<vmem>>, vector<8x128xf32>,
    } else {
    }
    return
  }
  func.func @transform_0(%arg0: i32, %arg1: i32) -> (i32, i32) {
    %c1_i32 = arith.constant 1 : i32
    %0 = arith.muli %arg0, %c1_i32 : i32
    %1 = arith.addi %0, %arg1 : i32
    %c0_i32 = arith.constant 0 : i32
    %c0_i32_0 = arith.constant 0 : i32
    return %1, %c0_i32 : i32, i32
  }
  func.func @transform_1(%arg0: i32, %arg1: i32) -> (i32, i32) {
    %c1_i32 = arith.constant 1 : i32
    %0 = arith.muli %arg0, %c1_i32 : i32
    %1 = arith.addi %0, %arg1 : i32
    %c0_i32 = arith.constant 0 : i32
    %c0_i32_0 = arith.constant 0 : i32
    return %1, %c0_i32 : i32, i32
  }
  func.func @transform_2(%arg0: i32, %arg1: i32) -> (i32, i32) {
    %c1_i32 = arith.constant 1 : i32
    %0 = arith.muli %arg0, %c1_i32 : i32
    %1 = arith.addi %0, %arg1 : i32
    %c0_i32 = arith.constant 0 : i32
    %c0_i32_0 = arith.constant 0 : i32
    return %1, %c0_i32 : i32, i32
  }
  func.func @transform_3(%arg0: i32, %arg1: i32) -> (i32, i32) {
    %c0_i32 = arith.constant 0 : i32
    %c0_i32_0 = arith.constant 0 : i32
    return %arg0, %c0_i32 : i32, i32
  }
}

</mosaic_0001>

<bundles_post_ra>
// kernel: tpu_custom_call.1
= control target key start
LH: loop header
LB: loop body
LE: loop exit
PB: predicated region body
PF: predicated region fallthrough
CT: control target
= control target key end

     0   :  { %8 = vsyncpa [#allocation4], 0  ;;  %s309_s0 = inlined_call_operand.hbm [shape: f32[8,32], index: 0, kind: input, shape index: {}]   ;;  %s310_s1 = inlined_call_operand.hbm [shape: f32[8,32], index: 1, kind: input, shape index: {}]   ;;  %s311_s2 = inlined_call_operand.hbm [shape: f32[8,32], index: 2, kind: input, shape index: {}]   ;;  %s312_s3 = inlined_call_operand.hbm [shape: f32[8,128], index: 3, kind: output, shape index: {}]  }
   0x1   :  { %9 = vsyncpa [#allocation7], 0 }
   0x2   :  { %10 = vsyncpa [#allocation5], 0  ;;  %s233_s12 = smov [#allocation6]   ;;  %s234_s14 = smov [#allocation3]  }
   0x3   :  { %s33_s13 = sshll.u32 %s233_s12, 4  ;;  %s20_s15 = sshll.u32 %s234_s14, 4  ;;  %s34_s13 = int_to_ptr.vmem [resolvable:$true] %s33_s13  ;;  %s21_s15 = int_to_ptr.vmem [resolvable:$true] %s20_s15 }
   0x4   :  { %s139_s18 = scalar_lea.hbm %s310_s1, 128 }
   0x5   :  { %p140_p0 = scmp.ne.s32.totalorder %s310_s1, %s139_s18  ;;  %p143_p1 = scmp.lt.u32.totalorder %s139_s18, %s310_s1 }
   0x7   :  { %p145_p2 = pnand %p143_p1, %p140_p0 }
   0x9   :  { %148 = shalt.err (!%p145_p2)
}
   0xa   :  { %s149_s23 = scalar_lea.vmem %s34_s13, 128  ;;  %p154_p4 = scmp.lt.s32.totalorder %s34_s13, %s34_s13 }
   0xb   :  { %p150_p3 = scmp.ne.s32.totalorder %s34_s13, %s149_s23  ;;  %p155_p5 = scmp.lt.s32.totalorder %s149_s23, %s149_s23 }
   0xd   :  { %p156_p6 = por %p155_p5, %p154_p4 }
   0xf   :  { %p157_p7 = pnand %p156_p6, %p150_p3 }
  0x11   :  { %160 = shalt.err (!%p157_p7)
}
  0x12   :  { %36 = dma.hbm_to_vmem [thread:$0]  %s310_s1, 128, %s34_s13, [#allocation7]  }
  0x13   :  { %s161_s28 = scalar_lea.hbm %s309_s0, 128 }
  0x14   :  { %p162_p8 = scmp.ne.s32.totalorder %s309_s0, %s161_s28  ;;  %p165_p9 = scmp.lt.u32.totalorder %s161_s28, %s309_s0 }
  0x16   :  { %p167_p10 = pnand %p165_p9, %p162_p8 }
  0x18   :  { %170 = shalt.err (!%p167_p10)
}
  0x19   :  { %s171_s6 = scalar_lea.vmem %s21_s15, 128  ;;  %p176_p12 = scmp.lt.s32.totalorder %s21_s15, %s21_s15 }
  0x1a   :  { %p172_p11 = scmp.ne.s32.totalorder %s21_s15, %s171_s6  ;;  %p177_p13 = scmp.lt.s32.totalorder %s171_s6, %s171_s6 }
  0x1c   :  { %p178_p0 = por %p177_p13, %p176_p12 }
  0x1e   :  { %p179_p1 = pnand %p178_p0, %p172_p11 }
  0x20   :  { %182 = shalt.err (!%p179_p1)
}
  0x21   :  { %23 = dma.hbm_to_vmem [thread:$0]  %s309_s0, 128, %s21_s15, [#allocation4]  }
  0x22   :  { %s235_s8 = smov [#allocation8]   ;;  %s183_s12 = scalar_lea.hbm %s311_s2, 128 }
  0x23   :  { %s46_s9 = sshll.u32 %s235_s8, 4  ;;  %p184_p2 = scmp.ne.s32.totalorder %s311_s2, %s183_s12  ;;  %s47_s9 = int_to_ptr.vmem [resolvable:$true] %s46_s9 }
  0x24   :  { %p187_p3 = scmp.lt.u32.totalorder %s183_s12, %s311_s2 }
  0x26   :  { %p189_p4 = pnand %p187_p3, %p184_p2 }
  0x28   :  { %192 = shalt.err (!%p189_p4)
}
  0x29   :  { %s193_s18 = scalar_lea.vmem %s47_s9, 128  ;;  %p198_p6 = scmp.lt.s32.totalorder %s47_s9, %s47_s9 }
  0x2a   :  { %p194_p5 = scmp.ne.s32.totalorder %s47_s9, %s193_s18  ;;  %p199_p7 = scmp.lt.s32.totalorder %s193_s18, %s193_s18 }
  0x2c   :  { %p200_p8 = por %p199_p7, %p198_p6 }
  0x2e   :  { %p201_p9 = pnand %p200_p8, %p194_p5 }
  0x30   :  { %204 = shalt.err (!%p201_p9)
}
  0x31   :  { %49 = dma.hbm_to_vmem [thread:$0]  %s311_s2, 128, %s47_s9, [#allocation7]  }
  0x32   :  { %227 = dma.done.wait [#allocation4], 128  }
  0x33   :  { %228 = vsyncadd [#allocation4], 4294967168 }
  0x34   :  { %229 = dma.done.wait [#allocation7], 256  }
  0x35   :  { %230 = vsyncadd [#allocation7], 4294967040  ;;  %v68_v0 = vld [vmem:[#allocation3] sm:$0xff]  ;;  %v69_v1 = vld [vmem:[#allocation6] sm:$0xff]  ;;  %vm76_vm0 = vcmask 261120   ;;  %vm83_vm1 = vcmask 7168   ;;  %v104_v25 = vlaneseq }
  0x36   :  { %v70_v2 = vld [vmem:[#allocation8] sm:$0xff]  ;;  %v71_v3 = vsub.f32 %v68_v0, %v69_v1  ;;  %vm66_vm2 = vcmask 0   ;;  %v236_v13 = vmov 0.0   ;;  %v237_v14 = vmov 0   ;;  %s238_s19 = smov [#allocation9]  }
  0x37   :  { %v72_v4 = vsub.f32 %v68_v0, %v70_v2  ;;  %67 = vst.msk [vmem:[#allocation2] sm:$0x1] %vm66_vm2, %v236_v13  ;;  %137 = vset.pattern.permute.xlu1 %v237_v14  ;;  %138 = vset.pattern.permute.xlu0 %v237_v14  ;;  %v105_v26 = vshrl.u32 %v104_v25, 7  ;;  %s119_s20 = sshll.u32 %s238_s19, 4  ;;  %s120_s20 = int_to_ptr.vmem [resolvable:$true] %s119_s20 }
  0x38   :  { %v73_v5 = vmul.f32 %v71_v3, %v71_v3  ;;  %s205_s21 = scalar_lea.vmem %s120_s20, 128  ;;  %p210_p11 = scmp.lt.s32.totalorder %s120_s20, %s120_s20 }
  0x39   :  { %v74_v6 = vmul.f32 %v72_v4, %v72_v4  ;;  %v106_v27 = vsub.s32 0, %v105_v26  ;;  %p206_p10 = scmp.ne.s32.totalorder %s120_s20, %s205_s21  ;;  %p211_p12 = scmp.lt.s32.totalorder %s205_s21, %s205_s21 }
  0x3b   :  { %v75_v7 = vsub.f32 %v73_v5, %v74_v6  ;;  %p212_p13 = por %p211_p12, %p210_p11 }
  0x3d   :  { %v77_v8 = vsel %vm76_vm0, %v75_v7, 0.0  ;;  %p213_p0 = pnand %p212_p13, %p206_p10 }
  0x3e   :  { %78 = vadd.xlane.f32.xlu0 %v77_v8  ;;  %v82_v22 = vld [vmem:[#allocation2] sm:$0x1] }
  0xcb   :  { %v79_v9 = vpop.xlane.xlu0 %78 }
  0xcc   :  { %v80_v10 = vadd.f32 1.0, %v79_v9 }
  0xce   :  { %v81_v11 = vmax.f32 %v80_v10, 0.0 }
  0xd0   :  { %v84_v12 = vsel %vm83_vm1, %v81_v11, 0.0 }
  0xd1   :  { %85 = vadd.xlane.f32.xlu0 %v84_v12 }
 0x15e   :  { %v86_v15 = vpop.xlane.xlu0 %85 }
 0x15f   :  { %v87_v16 = vrot.slane %v86_v15, 4 }
 0x161   :  { %v88_v17 = vadd.f32 %v87_v16, %v86_v15 }
 0x163   :  { %v89_v18 = vrot.slane %v88_v17, 2 }
 0x165   :  { %v90_v19 = vadd.f32 %v89_v18, %v88_v17 }
 0x167   :  { %v91_v20 = vrot.slane %v90_v19, 1 }
 0x169   :  { %v92_v21 = vadd.f32 %v91_v20, %v90_v19 }
 0x16b   :  { %129 = vpush %v92_v21 }
 0x19c   :  { %s130_s2 = spop %129 }
 0x19d   :  { %v94_v23 = vstv %s130_s2 }
 0x19e   :  { %v95_v24 = vadd.f32 %v94_v23, %v82_v22 }
 0x1a0   :  { %97 = vst.msk [vmem:[#allocation2] sm:$0x1] %vm66_vm2, %v95_v24 }
 0x1a7   :  { %v101_v28 = vld [vmem:[#allocation2] sm:$0x1] }
 0x1a8   :  { %v102_v29 = vmul.f32 0.125, %v101_v28 }
 0x1aa   :  { %v107_v30 = vrot.slane %v102_v29, %v106_v27 }
 0x1ac   :  { %109 = vperm.xlu1 %137, %v107_v30  }
 0x22b   :  { %v110_v31 = vpop.permute.xlu1 %109 }
 0x22c   :  { %112 = vst [vmem:[#allocation9] sm:$0xff] %v110_v31 }
 0x22d   :  { %216 = shalt.err (!%p213_p0)
}
 0x22e   :  { %s217_s24 = scalar_lea.hbm %s312_s3, 128 }
 0x22f   :  { %p218_p1 = scmp.ne.s32.totalorder %s312_s3, %s217_s24  ;;  %p221_p2 = scmp.lt.u32.totalorder %s217_s24, %s312_s3 }
 0x231   :  { %p223_p3 = pnand %p221_p2, %p218_p1 }
 0x233   :  { %226 = shalt.err (!%p223_p3)
}
 0x234   :  { %122 = dma.vmem_to_hbm [thread:$0]  %s120_s20, 128, %s312_s3, [#allocation5]  }
 0x235   :  { %231 = dma.done.wait [#allocation5], 128  }
 0x236   :  { %232 = vsyncadd [#allocation5], 4294967168 }
 0x237   :  { %126 = vsyncpa [#allocation4], 1 }
 0x238   :  { %127 = vsyncpa [#allocation7], 1 }
 0x239   :  { %128 = vsyncpa [#allocation5], 1 }

</bundles_post_ra>
